<compile_context>
chip_gen: v6e
topology: v6e:2x2x1
jax: 0.10.0
libtpu: 0.0.40
codegen_flags: <defaults>
</compile_context>

<pallas_src>
import functools

import jax
import jax.numpy as jnp
from jax.experimental import pallas as pl
from jax.experimental.pallas import tpu as pltpu


def _round_up(x, m):
    return (x + m - 1) // m * m


# ---------------------------------------------------------------------------
# Shared per-tile EdgeConv math (one destination-row block).
# ---------------------------------------------------------------------------
def _edgeconv_tile(h_ref, adj_ref, w_ref, b_ref, row0, tm):
    c = h_ref.shape[1]
    adj = adj_ref[...].astype(jnp.float32)                      # (TM, N) bf16->f32 (exact)
    deg = jnp.sum(adj, axis=1, keepdims=True)                   # (TM, 1)
    mask = (deg > 0).astype(jnp.float32)                        # isolated-node mask
    inv_deg = 1.0 / jnp.maximum(deg, 1.0)                       # (TM,1) divides only

    # mean_j x_j : un-normalised matmul, then cheap post-scale (no N^2 divide).
    agg = jnp.dot(adj, h_ref[...], preferred_element_type=jnp.float32) * inv_deg
    h_dst = h_ref[pl.ds(row0, tm), :]                           # (TM, C) dst features

    out = (jnp.dot(h_dst, w_ref[:c, :], preferred_element_type=jnp.float32)
           + jnp.dot(agg, w_ref[c:, :], preferred_element_type=jnp.float32)
           + b_ref[...])
    return jnp.maximum(out, 0.0) * mask                         # ReLU + zero isolated


# ---------------------------------------------------------------------------
# Kernel 1: standalone EdgeConv layer (produces h_k for all nodes).
# ---------------------------------------------------------------------------
def _edgeconv_kernel(h_ref, adj_ref, w_ref, b_ref, o_ref):
    tm = o_ref.shape[0]
    row0 = pl.multiple_of(pl.program_id(0) * tm, tm)
    o_ref[...] = _edgeconv_tile(h_ref, adj_ref, w_ref, b_ref, row0, tm)


# ---------------------------------------------------------------------------
# Kernel 2: last EdgeConv layer fused with the final Linear over cat(xs, -1)
# (concat-free: running sum of per-segment matmuls).
# ---------------------------------------------------------------------------
def _make_last_kernel(num_prev, cat):
    def kernel(*refs):
        prev = refs[:num_prev]                                  # [x, h1, ..., h_{L-1}]
        adj_ref, w_ref, b_ref, wf_ref, bf_ref, o_ref = refs[num_prev:]
        tm = o_ref.shape[0]
        row0 = pl.multiple_of(pl.program_id(0) * tm, tm)

        h_last = _edgeconv_tile(prev[-1], adj_ref, w_ref, b_ref, row0, tm)

        segs = []
        if cat:
            segs += [(fr[pl.ds(row0, tm), :], fr.shape[1]) for fr in prev]
        segs.append((h_last, h_last.shape[1]))

        acc = None
        off = 0
        for f_tile, d in segs:
            part = jnp.dot(f_tile, wf_ref[off:off + d, :],
                           preferred_element_type=jnp.float32)
            acc = part if acc is None else acc + part
            off += d
        o_ref[...] = acc + bf_ref[...]

    return kernel


# ---------------------------------------------------------------------------
# Parameters (deterministic init, shapes follow the PyTorch module).
# ---------------------------------------------------------------------------
def init_params(key, in_channels, out_channels, num_layers, cat=True, lin=True):
    params = {"convs": []}
    c_in = in_channels
    for _ in range(num_layers):
        key, k1, k2 = jax.random.split(key, 3)
        bound = 1.0 / float(jnp.sqrt(2.0 * c_in))
        W = jax.random.uniform(k1, (out_channels, 2 * c_in), jnp.float32, -bound, bound)
        b = jax.random.uniform(k2, (out_channels,), jnp.float32, -bound, bound)
        params["convs"].append((W, b))
        c_in = out_channels
    final_in = in_channels + num_layers * out_channels if cat else out_channels
    if lin:
        key, k1, k2 = jax.random.split(key, 3)
        bound = 1.0 / float(jnp.sqrt(float(final_in)))
        Wf = jax.random.uniform(k1, (out_channels, final_in), jnp.float32, -bound, bound)
        bf = jax.random.uniform(k2, (out_channels,), jnp.float32, -bound, bound)
        params["final"] = (Wf, bf)
    return params


# ---------------------------------------------------------------------------
# Forward: edge-list scatter + weight packing in plain JAX, the rest in tiled
# Pallas kernels.
# ---------------------------------------------------------------------------
@functools.partial(jax.jit, static_argnames=("cat", "lin"))
def edge_gnn_forward(x, edge_index, params, cat=True, lin=True):
    n, c_in = x.shape
    num_layers = len(params["convs"])

    # Destination-row tile size: multiple of 8, up to 256 (fits all VMEM gens
    # comfortably; "parallel" axis shards tiles across TCs on v7x).
    tm = min(256, _round_up(n, 8))
    n_pad = _round_up(n, tm)
    grid = (n_pad // tm,)

    # TODO(synk): dense adjacency scatter stays in XLA (no clean Pallas scatter).
    src, dst = edge_index[0], edge_index[1]
    adj = jnp.zeros((n_pad, n_pad), jnp.float32).at[dst, src].add(1.0)
    # Edge-multiplicity counts are small integers -> exact in bf16; bf16 storage
    # halves the dominant HBM/DMA traffic (counts > 256 would not be exact).
    adj = adj.astype(jnp.bfloat16)

    x_pad = jnp.pad(x, ((0, n_pad - n), (0, 0))) if n_pad != n else x

    compiler_params = pltpu.CompilerParams(
        dimension_semantics=("parallel",),         # megacore sharding on v7x
        vmem_limit_bytes=32 * 1024 * 1024,         # <= physical on v5e/v6e/v7x
    )

    def full(shape):
        return pl.BlockSpec(shape, lambda i: (0, 0))

    def row_tile(c):
        return pl.BlockSpec((tm, c), lambda i: (i, 0))

    adj_spec = pl.BlockSpec((tm, n_pad), lambda i: (i, 0))

    def pack_conv_weights(W, b, c_prev):
        W1, W2 = W[:, :c_prev], W[:, c_prev:]
        # rows [0:c_prev] multiply x_i, rows [c_prev:] multiply mean_j x_j
        w_pack = jnp.concatenate([(W1 - W2).T, W2.T], axis=0)   # (2*c_prev, c_out)
        return w_pack, b.reshape(1, -1)

    feats = [x_pad]                 # per-node features, (n_pad, c), kept in HBM
    h = x_pad
    c_prev = c_in
    last_fused = lin and num_layers > 0
    n_standalone = num_layers - 1 if last_fused else num_layers

    for li in range(n_standalone):
        W, b = params["convs"][li]
        c_out = W.shape[0]
        w_pack, b_row = pack_conv_weights(W, b, c_prev)
        h = pl.pallas_call(
            _edgeconv_kernel,
            out_shape=jax.ShapeDtypeStruct((n_pad, c_out), jnp.float32),
            grid=grid,
            in_specs=[full((n_pad, c_prev)), adj_spec,
                      full((2 * c_prev, c_out)), full((1, c_out))],
            out_specs=row_tile(c_out),
            compiler_params=compiler_params,
        )(h, adj, w_pack, b_row)
        feats.append(h)
        c_prev = c_out

    if last_fused:
        W, b = params["convs"][-1]
        c_out = W.shape[0]
        w_pack, b_row = pack_conv_weights(W, b, c_prev)
        Wf, bf = params["final"]
        out_dim = Wf.shape[0]
        wf_t = Wf.T                                             # (F_total, out_dim)

        prev_feats = feats if cat else [feats[-1]]
        kernel = _make_last_kernel(len(prev_feats), cat)
        out = pl.pallas_call(
            kernel,
            out_shape=jax.ShapeDtypeStruct((n_pad, out_dim), jnp.float32),
            grid=grid,
            in_specs=([full(f.shape) for f in prev_feats]
                      + [adj_spec, full((2 * c_prev, c_out)), full((1, c_out)),
                         full(wf_t.shape), full((1, out_dim))]),
            out_specs=row_tile(out_dim),
            compiler_params=compiler_params,
        )(*prev_feats, adj, w_pack, b_row, wf_t, bf.reshape(1, -1))
        return out[:n]

    # lin=False (or num_layers==0 fallback): trivial tail in plain JAX.
    out = jnp.concatenate(feats, axis=-1) if cat else feats[-1]
    if lin:  # only reachable when num_layers == 0
        Wf, bf = params["final"]
        out = out @ Wf.T + bf
    return out[:n]


# ---------------------------------------------------------------------------
# Pure-JAX reference (edge-wise, mirrors PyG EdgeConv aggr='mean' exactly).
# ---------------------------------------------------------------------------
def reference_forward(x, edge_index, params, cat=True, lin=True):
    n = x.shape[0]
    src, dst = edge_index[0], edge_index[1]
    h = x
    xs = [x]
    for (W, b) in params["convs"]:
        x_i = h[dst]
        x_j = h[src]
        msg = jnp.concatenate([x_i, x_j - x_i], axis=-1) @ W.T + b
        summ = jnp.zeros((n, W.shape[0]), jnp.float32).at[dst].add(msg)
        cnt = jnp.zeros((n,), jnp.float32).at[dst].add(1.0)
        h = jax.nn.relu(summ / jnp.maximum(cnt, 1.0)[:, None])
        xs.append(h)
    h = jnp.concatenate(xs, axis=-1) if cat else xs[-1]
    if lin:
        Wf, bf = params["final"]
        h = h @ Wf.T + bf
    return h


if __name__ == "__main__":
    N, E = 64, 256
    IN_CHANNELS, OUT_CHANNELS, NUM_LAYERS = 16, 32, 2

    key = jax.random.PRNGKey(0)
    kx, ke, kp = jax.random.split(key, 3)
    x = jax.random.normal(kx, (N, IN_CHANNELS), jnp.float32)
    edge_index = jax.random.randint(ke, (2, E), 0, N, jnp.int32)
    params = init_params(kp, IN_CHANNELS, OUT_CHANNELS, NUM_LAYERS,
                         cat=True, lin=True)

    out = edge_gnn_forward(x, edge_index, params, cat=True, lin=True)
    out = jax.block_until_ready(out)

    ref = reference_forward(x, edge_index, params, cat=True, lin=True)
    assert out.shape == (N, OUT_CHANNELS), out.shape
    assert jnp.allclose(out, ref, rtol=1e-4, atol=1e-4), float(
        jnp.max(jnp.abs(out - ref)))

    print("KERNEL_OK")
</pallas_src>

<mosaic_0001>
module attributes {stable_mosaic.version = 11 : i64} {
  func.func private @main(%arg0: i32) attributes {dimension_semantics = [#tpu.dimension_semantics<core_parallel>], iteration_bounds = array<i64: 2>, tpu.core_type = #tpu.core_type<sc_scalar_subcore>, window_params = []} {
    return
  }
}

module attributes {stable_mosaic.version = 11 : i64} {
  func.func private @main(%arg0: i32) attributes {dimension_semantics = [#tpu.dimension_semantics<core_parallel>], iteration_bounds = array<i64: 2>, tpu.core_type = #tpu.core_type<sc_scalar_subcore>, window_params = []} {
    return
  }
}

module attributes {stable_mosaic.version = 11 : i64} {
  func.func @kernel(%arg0: i32, %arg1: memref<64x16xf32, #tpu.memory_space<vmem>>, %arg2: memref<64x32xf32, #tpu.memory_space<vmem>>, %arg3: memref<64x64xbf16, #tpu.memory_space<vmem>>, %arg4: memref<64x32xf32, #tpu.memory_space<vmem>>, %arg5: memref<1x32xf32, #tpu.memory_space<vmem>>, %arg6: memref<80x32xf32, #tpu.memory_space<vmem>>, %arg7: memref<1x32xf32, #tpu.memory_space<vmem>>, %arg8: memref<64x32xf32, #tpu.memory_space<vmem>>) attributes {dimension_semantics = [#tpu.dimension_semantics<parallel>], iteration_bounds = array<i64: 1>, scalar_prefetch = 0 : i64, scratch_operands = 0 : i64, tpu.core_type = #tpu.core_type<tc>, window_params = [{pipeline_mode = #tpu.pipeline_mode<synchronous>, transform_indices = @transform_0, window_bounds = array<i64: 64, 16>}, {pipeline_mode = #tpu.pipeline_mode<synchronous>, transform_indices = @transform_1, window_bounds = array<i64: 64, 32>}, {transform_indices = @transform_2, window_bounds = array<i64: 64, 64>}, {pipeline_mode = #tpu.pipeline_mode<synchronous>, transform_indices = @transform_3, window_bounds = array<i64: 64, 32>}, {pipeline_mode = #tpu.pipeline_mode<synchronous>, transform_indices = @transform_4, window_bounds = array<i64: 1, 32>}, {pipeline_mode = #tpu.pipeline_mode<synchronous>, transform_indices = @transform_5, window_bounds = array<i64: 80, 32>}, {pipeline_mode = #tpu.pipeline_mode<synchronous>, transform_indices = @transform_6, window_bounds = array<i64: 1, 32>}, {transform_indices = @transform_7, window_bounds = array<i64: 64, 32>}]} {
    %c64_i32 = arith.constant 64 : i32
    %0 = arith.muli %arg0, %c64_i32 : i32
    %1 = tpu.assume_multiple %0, 64 : i32
    %c0 = arith.constant 0 : index
    %c0_0 = arith.constant 0 : index
    %2 = vector.load %arg3[%c0, %c0_0] : memref<64x64xbf16, #tpu.memory_space<vmem>>, vector<64x64xbf16>
    %3 = arith.extf %2 : vector<64x64xbf16> to vector<64x64xf32>
    %cst = arith.constant dense<0.000000e+00> : vector<64xf32>
    %4 = vector.multi_reduction <add>, %3, %cst [1] : vector<64x64xf32> to vector<64xf32>
    %5 = vector.shape_cast %4 : vector<64xf32> to vector<64x1xf32>
    %cst_1 = arith.constant 0.000000e+00 : f32
    %6 = vector.broadcast %cst_1 : f32 to vector<64x1xf32>
    %7 = arith.cmpf ogt, %5, %6 : vector<64x1xf32>
    %8 = arith.extui %7 : vector<64x1xi1> to vector<64x1xi32>
    %9 = arith.sitofp %8 : vector<64x1xi32> to vector<64x1xf32>
    %cst_2 = arith.constant 1.000000e+00 : f32
    %10 = vector.broadcast %cst_2 : f32 to vector<64x1xf32>
    %11 = arith.maximumf %5, %10 : vector<64x1xf32>
    %cst_3 = arith.constant 1.000000e+00 : f32
    %12 = vector.broadcast %cst_3 : f32 to vector<64x1xf32>
    %13 = arith.divf %12, %11 : vector<64x1xf32>
    %c0_4 = arith.constant 0 : index
    %c0_5 = arith.constant 0 : index
    %14 = vector.load %arg2[%c0_4, %c0_5] : memref<64x32xf32, #tpu.memory_space<vmem>>, vector<64x32xf32>
    %cst_6 = arith.constant dense<0.000000e+00> : vector<64x32xf32>
    %15 = tpu.matmul %3, %14, %cst_6 {dimension_numbers = #tpu.dot_dimension_numbers<[1], [0], [0], [1], [0, 0, 1, 1], [], []>} : vector<64x64xf32>, vector<64x32xf32>, vector<64x32xf32> -> vector<64x32xf32>
    %16 = vector.broadcast %13 : vector<64x1xf32> to vector<64x32xf32>
    %17 = arith.mulf %15, %16 : vector<64x32xf32>
    %18 = arith.index_cast %1 : i32 to index
    %c0_7 = arith.constant 0 : index
    %19 = vector.load %arg2[%18, %c0_7] : memref<64x32xf32, #tpu.memory_space<vmem>>, vector<64x32xf32>
    %c0_8 = arith.constant 0 : index
    %c0_9 = arith.constant 0 : index
    %20 = vector.load %arg4[%c0_8, %c0_9] : memref<64x32xf32, #tpu.memory_space<vmem>>, vector<32x32xf32>
    %cst_10 = arith.constant dense<0.000000e+00> : vector<64x32xf32>
    %21 = tpu.matmul %19, %20, %cst_10 {dimension_numbers = #tpu.dot_dimension_numbers<[1], [0], [0], [1], [0, 0, 1, 1], [], []>} : vector<64x32xf32>, vector<32x32xf32>, vector<64x32xf32> -> vector<64x32xf32>
    %c32 = arith.constant 32 : index
    %c0_11 = arith.constant 0 : index
    %22 = vector.load %arg4[%c32, %c0_11] : memref<64x32xf32, #tpu.memory_space<vmem>>, vector<32x32xf32>
    %cst_12 = arith.constant dense<0.000000e+00> : vector<64x32xf32>
    %23 = tpu.matmul %17, %22, %cst_12 {dimension_numbers = #tpu.dot_dimension_numbers<[1], [0], [0], [1], [0, 0, 1, 1], [], []>} : vector<64x32xf32>, vector<32x32xf32>, vector<64x32xf32> -> vector<64x32xf32>
    %24 = arith.addf %21, %23 : vector<64x32xf32>
    %c0_13 = arith.constant 0 : index
    %c0_14 = arith.constant 0 : index
    %25 = vector.load %arg5[%c0_13, %c0_14] : memref<1x32xf32, #tpu.memory_space<vmem>>, vector<1x32xf32>
    %26 = vector.broadcast %25 : vector<1x32xf32> to vector<64x32xf32>
    %27 = arith.addf %24, %26 : vector<64x32xf32>
    %cst_15 = arith.constant 0.000000e+00 : f32
    %28 = vector.broadcast %cst_15 : f32 to vector<64x32xf32>
    %29 = arith.maximumf %27, %28 : vector<64x32xf32>
    %30 = vector.broadcast %9 : vector<64x1xf32> to vector<64x32xf32>
    %31 = arith.mulf %29, %30 : vector<64x32xf32>
    %32 = arith.index_cast %1 : i32 to index
    %c0_16 = arith.constant 0 : index
    %33 = vector.load %arg1[%32, %c0_16] : memref<64x16xf32, #tpu.memory_space<vmem>>, vector<64x16xf32>
    %34 = arith.index_cast %1 : i32 to index
    %c0_17 = arith.constant 0 : index
    %35 = vector.load %arg2[%34, %c0_17] : memref<64x32xf32, #tpu.memory_space<vmem>>, vector<64x32xf32>
    %c0_18 = arith.constant 0 : index
    %c0_19 = arith.constant 0 : index
    %36 = vector.load %arg6[%c0_18, %c0_19] : memref<80x32xf32, #tpu.memory_space<vmem>>, vector<16x32xf32>
    %cst_20 = arith.constant dense<0.000000e+00> : vector<64x32xf32>
    %37 = tpu.matmul %33, %36, %cst_20 {dimension_numbers = #tpu.dot_dimension_numbers<[1], [0], [0], [1], [0, 0, 1, 1], [], []>} : vector<64x16xf32>, vector<16x32xf32>, vector<64x32xf32> -> vector<64x32xf32>
    %c16 = arith.constant 16 : index
    %c0_21 = arith.constant 0 : index
    %38 = vector.load %arg6[%c16, %c0_21] : memref<80x32xf32, #tpu.memory_space<vmem>>, vector<32x32xf32>
    %cst_22 = arith.constant dense<0.000000e+00> : vector<64x32xf32>
    %39 = tpu.matmul %35, %38, %cst_22 {dimension_numbers = #tpu.dot_dimension_numbers<[1], [0], [0], [1], [0, 0, 1, 1], [], []>} : vector<64x32xf32>, vector<32x32xf32>, vector<64x32xf32> -> vector<64x32xf32>
    %40 = arith.addf %37, %39 : vector<64x32xf32>
    %c48 = arith.constant 48 : index
    %c0_23 = arith.constant 0 : index
    %41 = vector.load %arg6[%c48, %c0_23] : memref<80x32xf32, #tpu.memory_space<vmem>>, vector<32x32xf32>
    %cst_24 = arith.constant dense<0.000000e+00> : vector<64x32xf32>
    %42 = tpu.matmul %31, %41, %cst_24 {dimension_numbers = #tpu.dot_dimension_numbers<[1], [0], [0], [1], [0, 0, 1, 1], [], []>} : vector<64x32xf32>, vector<32x32xf32>, vector<64x32xf32> -> vector<64x32xf32>
    %43 = arith.addf %40, %42 : vector<64x32xf32>
    %c0_25 = arith.constant 0 : index
    %c0_26 = arith.constant 0 : index
    %44 = vector.load %arg7[%c0_25, %c0_26] : memref<1x32xf32, #tpu.memory_space<vmem>>, vector<1x32xf32>
    %45 = vector.broadcast %44 : vector<1x32xf32> to vector<64x32xf32>
    %46 = arith.addf %43, %45 : vector<64x32xf32>
    %c0_27 = arith.constant 0 : index
    %c0_28 = arith.constant 0 : index
    %47 = vector.load %arg8[%c0_27, %c0_28] : memref<64x32xf32, #tpu.memory_space<vmem>>, vector<64x32xf32>
    tpu.vector_store %arg8[%c0_27, %c0_28], %46 {strides = array<i32>} : memref<64x32xf32, #tpu.memory_space<vmem>>, vector<64x32xf32>,
    return
  }
  func.func @transform_0(%arg0: i32) -> (i32, i32) {
    %c0_i32 = arith.constant 0 : i32
    %c0_i32_0 = arith.constant 0 : i32
    %c0_i32_1 = arith.constant 0 : i32
    return %c0_i32, %c0_i32_0 : i32, i32
  }
  func.func @transform_1(%arg0: i32) -> (i32, i32) {
    %c0_i32 = arith.constant 0 : i32
    %c0_i32_0 = arith.constant 0 : i32
    %c0_i32_1 = arith.constant 0 : i32
    return %c0_i32, %c0_i32_0 : i32, i32
  }
  func.func @transform_2(%arg0: i32) -> (i32, i32) {
    %c0_i32 = arith.constant 0 : i32
    %c0_i32_0 = arith.constant 0 : i32
    return %arg0, %c0_i32 : i32, i32
  }
  func.func @transform_3(%arg0: i32) -> (i32, i32) {
    %c0_i32 = arith.constant 0 : i32
    %c0_i32_0 = arith.constant 0 : i32
    %c0_i32_1 = arith.constant 0 : i32
    return %c0_i32, %c0_i32_0 : i32, i32
  }
  func.func @transform_4(%arg0: i32) -> (i32, i32) {
    %c0_i32 = arith.constant 0 : i32
    %c0_i32_0 = arith.constant 0 : i32
    %c0_i32_1 = arith.constant 0 : i32
    return %c0_i32, %c0_i32_0 : i32, i32
  }
  func.func @transform_5(%arg0: i32) -> (i32, i32) {
    %c0_i32 = arith.constant 0 : i32
    %c0_i32_0 = arith.constant 0 : i32
    %c0_i32_1 = arith.constant 0 : i32
    return %c0_i32, %c0_i32_0 : i32, i32
  }
  func.func @transform_6(%arg0: i32) -> (i32, i32) {
    %c0_i32 = arith.constant 0 : i32
    %c0_i32_0 = arith.constant 0 : i32
    %c0_i32_1 = arith.constant 0 : i32
    return %c0_i32, %c0_i32_0 : i32, i32
  }
  func.func @transform_7(%arg0: i32) -> (i32, i32) {
    %c0_i32 = arith.constant 0 : i32
    %c0_i32_0 = arith.constant 0 : i32
    return %arg0, %c0_i32 : i32, i32
  }
}

module attributes {stable_mosaic.version = 11 : i64} {
  func.func @_edgeconv_kernel(%arg0: i32, %arg1: memref<64x16xf32, #tpu.memory_space<vmem>>, %arg2: memref<64x64xbf16, #tpu.memory_space<vmem>>, %arg3: memref<32x32xf32, #tpu.memory_space<vmem>>, %arg4: memref<1x32xf32, #tpu.memory_space<vmem>>, %arg5: memref<64x32xf32, #tpu.memory_space<vmem>>) attributes {dimension_semantics = [#tpu.dimension_semantics<parallel>], iteration_bounds = array<i64: 1>, scalar_prefetch = 0 : i64, scratch_operands = 0 : i64, tpu.core_type = #tpu.core_type<tc>, window_params = [{pipeline_mode = #tpu.pipeline_mode<synchronous>, transform_indices = @transform_0, window_bounds = array<i64: 64, 16>}, {transform_indices = @transform_1, window_bounds = array<i64: 64, 64>}, {pipeline_mode = #tpu.pipeline_mode<synchronous>, transform_indices = @transform_2, window_bounds = array<i64: 32, 32>}, {pipeline_mode = #tpu.pipeline_mode<synchronous>, transform_indices = @transform_3, window_bounds = array<i64: 1, 32>}, {transform_indices = @transform_4, window_bounds = array<i64: 64, 32>}]} {
    %c64_i32 = arith.constant 64 : i32
    %0 = arith.muli %arg0, %c64_i32 : i32
    %1 = tpu.assume_multiple %0, 64 : i32
    %c0 = arith.constant 0 : index
    %c0_0 = arith.constant 0 : index
    %2 = vector.load %arg2[%c0, %c0_0] : memref<64x64xbf16, #tpu.memory_space<vmem>>, vector<64x64xbf16>
    %3 = arith.extf %2 : vector<64x64xbf16> to vector<64x64xf32>
    %cst = arith.constant dense<0.000000e+00> : vector<64xf32>
    %4 = vector.multi_reduction <add>, %3, %cst [1] : vector<64x64xf32> to vector<64xf32>
    %5 = vector.shape_cast %4 : vector<64xf32> to vector<64x1xf32>
    %cst_1 = arith.constant 0.000000e+00 : f32
    %6 = vector.broadcast %cst_1 : f32 to vector<64x1xf32>
    %7 = arith.cmpf ogt, %5, %6 : vector<64x1xf32>
    %8 = arith.extui %7 : vector<64x1xi1> to vector<64x1xi32>
    %9 = arith.sitofp %8 : vector<64x1xi32> to vector<64x1xf32>
    %cst_2 = arith.constant 1.000000e+00 : f32
    %10 = vector.broadcast %cst_2 : f32 to vector<64x1xf32>
    %11 = arith.maximumf %5, %10 : vector<64x1xf32>
    %cst_3 = arith.constant 1.000000e+00 : f32
    %12 = vector.broadcast %cst_3 : f32 to vector<64x1xf32>
    %13 = arith.divf %12, %11 : vector<64x1xf32>
    %c0_4 = arith.constant 0 : index
    %c0_5 = arith.constant 0 : index
    %14 = vector.load %arg1[%c0_4, %c0_5] : memref<64x16xf32, #tpu.memory_space<vmem>>, vector<64x16xf32>
    %cst_6 = arith.constant dense<0.000000e+00> : vector<64x16xf32>
    %15 = tpu.matmul %3, %14, %cst_6 {dimension_numbers = #tpu.dot_dimension_numbers<[1], [0], [0], [1], [0, 0, 1, 1], [], []>} : vector<64x64xf32>, vector<64x16xf32>, vector<64x16xf32> -> vector<64x16xf32>
    %16 = vector.broadcast %13 : vector<64x1xf32> to vector<64x16xf32>
    %17 = arith.mulf %15, %16 : vector<64x16xf32>
    %18 = arith.index_cast %1 : i32 to index
    %c0_7 = arith.constant 0 : index
    %19 = vector.load %arg1[%18, %c0_7] : memref<64x16xf32, #tpu.memory_space<vmem>>, vector<64x16xf32>
    %c0_8 = arith.constant 0 : index
    %c0_9 = arith.constant 0 : index
    %20 = vector.load %arg3[%c0_8, %c0_9] : memref<32x32xf32, #tpu.memory_space<vmem>>, vector<16x32xf32>
    %cst_10 = arith.constant dense<0.000000e+00> : vector<64x32xf32>
    %21 = tpu.matmul %19, %20, %cst_10 {dimension_numbers = #tpu.dot_dimension_numbers<[1], [0], [0], [1], [0, 0, 1, 1], [], []>} : vector<64x16xf32>, vector<16x32xf32>, vector<64x32xf32> -> vector<64x32xf32>
    %c16 = arith.constant 16 : index
    %c0_11 = arith.constant 0 : index
    %22 = vector.load %arg3[%c16, %c0_11] : memref<32x32xf32, #tpu.memory_space<vmem>>, vector<16x32xf32>
    %cst_12 = arith.constant dense<0.000000e+00> : vector<64x32xf32>
    %23 = tpu.matmul %17, %22, %cst_12 {dimension_numbers = #tpu.dot_dimension_numbers<[1], [0], [0], [1], [0, 0, 1, 1], [], []>} : vector<64x16xf32>, vector<16x32xf32>, vector<64x32xf32> -> vector<64x32xf32>
    %24 = arith.addf %21, %23 : vector<64x32xf32>
    %c0_13 = arith.constant 0 : index
    %c0_14 = arith.constant 0 : index
    %25 = vector.load %arg4[%c0_13, %c0_14] : memref<1x32xf32, #tpu.memory_space<vmem>>, vector<1x32xf32>
    %26 = vector.broadcast %25 : vector<1x32xf32> to vector<64x32xf32>
    %27 = arith.addf %24, %26 : vector<64x32xf32>
    %cst_15 = arith.constant 0.000000e+00 : f32
    %28 = vector.broadcast %cst_15 : f32 to vector<64x32xf32>
    %29 = arith.maximumf %27, %28 : vector<64x32xf32>
    %30 = vector.broadcast %9 : vector<64x1xf32> to vector<64x32xf32>
    %31 = arith.mulf %29, %30 : vector<64x32xf32>
    %c0_16 = arith.constant 0 : index
    %c0_17 = arith.constant 0 : index
    %32 = vector.load %arg5[%c0_16, %c0_17] : memref<64x32xf32, #tpu.memory_space<vmem>>, vector<64x32xf32>
    tpu.vector_store %arg5[%c0_16, %c0_17], %31 {strides = array<i32>} : memref<64x32xf32, #tpu.memory_space<vmem>>, vector<64x32xf32>,
    return
  }
  func.func @transform_0(%arg0: i32) -> (i32, i32) {
    %c0_i32 = arith.constant 0 : i32
    %c0_i32_0 = arith.constant 0 : i32
    %c0_i32_1 = arith.constant 0 : i32
    return %c0_i32, %c0_i32_0 : i32, i32
  }
  func.func @transform_1(%arg0: i32) -> (i32, i32) {
    %c0_i32 = arith.constant 0 : i32
    %c0_i32_0 = arith.constant 0 : i32
    return %arg0, %c0_i32 : i32, i32
  }
  func.func @transform_2(%arg0: i32) -> (i32, i32) {
    %c0_i32 = arith.constant 0 : i32
    %c0_i32_0 = arith.constant 0 : i32
    %c0_i32_1 = arith.constant 0 : i32
    return %c0_i32, %c0_i32_0 : i32, i32
  }
  func.func @transform_3(%arg0: i32) -> (i32, i32) {
    %c0_i32 = arith.constant 0 : i32
    %c0_i32_0 = arith.constant 0 : i32
    %c0_i32_1 = arith.constant 0 : i32
    return %c0_i32, %c0_i32_0 : i32, i32
  }
  func.func @transform_4(%arg0: i32) -> (i32, i32) {
    %c0_i32 = arith.constant 0 : i32
    %c0_i32_0 = arith.constant 0 : i32
    return %arg0, %c0_i32 : i32, i32
  }
}

</mosaic_0001>

<bundles_post_ra>
// kernel: edge_gnn_forward.2
= control target key start
LH: loop header
LB: loop body
LE: loop exit
PB: predicated region body
PF: predicated region fallthrough
CT: control target
= control target key end

     0   :  { %vm34_vm0 = vcmask 523264   ;;  %vm265_vm1 = vcmask 130048   ;;  %vm555_vm5 = vcmask 261120   ;;  %s948_s0 = inlined_call_operand.vmem [shape: f32[64,16], index: 0, kind: input, shape index: {}]   ;;  %s949_s1 = inlined_call_operand.vmem [shape: bf16[64,64], index: 1, kind: input, shape index: {}]   ;;  %s950_s2 = inlined_call_operand.vmem [shape: f32[32,32], index: 2, kind: input, shape index: {}]   ;;  %s951_s3 = inlined_call_operand.vmem [shape: f32[1,32], index: 3, kind: input, shape index: {}]   ;;  %s952_s4 = inlined_call_operand.vmem [shape: f32[64,32], index: 4, kind: output, shape index: {}]  }
   0x1   :  { %v762_v0 = vld [vmem:[%s948_s0 + $0x38] sm:$0xff]  ;;  %v767_v1 = vld [vmem:[%s948_s0 + $0x30] sm:$0xff]  ;;  %v774_v2 = vld [vmem:[%s948_s0 + $0x28] sm:$0xff] }
   0x2   :  { %656 = vmatprep.subr.mxu0 %v762_v0  ;;  %v602_v3 = vld [vmem:[%s949_s1] sm:$0xff]   ;;  %v617_v5 = vld [vmem:[%s949_s1 + $0x8] sm:$0xff]   ;;  %v796_v10 = vld [vmem:[%s948_s0 + $0x18] sm:$0xff] }
   0x3   :  { %657 = vmatpush3.msra.mxu0 %v762_v0  ;;  %v603_v4 = vunpack.c.l.bf16 %v602_v3  ;;  %v787_v6 = vld [vmem:[%s948_s0 + $0x20] sm:$0xff]  ;;  %v607_v7 = vunpack.c.l.bf16 %v617_v5  ;;  %v604_v8 = vunpack.c.h.bf16 %v602_v3  ;;  %v608_v11 = vunpack.c.h.bf16 %v617_v5  ;;  %v618_v12 = vld [vmem:[%s949_s1 + $0x10] sm:$0xff]   ;;  %v816_v18 = vld [vmem:[%s948_s0 + $0x8] sm:$0xff] }
   0x4   :  { %658 = vmatprep.subr.mxu0 %v767_v1  ;;  %v808_v15 = vld [vmem:[%s948_s0 + $0x10] sm:$0xff]  ;;  %v611_v17 = vunpack.c.l.bf16 %v618_v12  ;;  %v612_v19 = vunpack.c.h.bf16 %v618_v12  ;;  %v619_v20 = vld [vmem:[%s949_s1 + $0x18] sm:$0xff]   ;;  %v827_v22 = vld [vmem:[%s948_s0] sm:$0xff] }
   0x5   :  { %659 = vmatpush3.msra.mxu0 %v767_v1  ;;  %672 = vmatprep.mubr.msk.f32.mxu0 %vm34_vm0, %v603_v4  ;;  %v35_v9 = vsel %vm34_vm0, %v603_v4, 0.0  ;;  %v41_v13 = vsel %vm34_vm0, %v607_v7, 0.0  ;;  %v38_v14 = vsel %vm34_vm0, %v604_v8, 0.0  ;;  %v44_v16 = vsel %vm34_vm0, %v608_v11, 0.0  ;;  %v264_v28 = vld [vmem:[%s950_s2 + $0x18] sm:$0xff]  ;;  %v263_v29 = vld [vmem:[%s950_s2 + $0x10] sm:$0xff] }
   0x6   :  { %660 = vmatprep.subr.mxu0 %v774_v2  ;;  %36 = vadd.xlane.f32.xlu0 %v35_v9  ;;  %v47_v21 = vsel %vm34_vm0, %v611_v17, 0.0  ;;  %v50_v23 = vsel %vm34_vm0, %v612_v19, 0.0  ;;  %v615_v24 = vunpack.c.l.bf16 %v619_v20  ;;  %v616_v25 = vunpack.c.h.bf16 %v619_v20  ;;  %v262_v30 = vld [vmem:[%s950_s2 + $0x8] sm:$0xff]  ;;  %v261_v55 = vld [vmem:[%s950_s2] sm:$0xff] }
   0x7   :  { %661 = vmatpush3.msra.mxu0 %v774_v2  ;;  %42 = vadd.xlane.f32.xlu1 %v41_v13 }
   0x8   :  { %662 = vmatprep.subr.mxu0 %v787_v6  ;;  %v53_v26 = vsel %vm34_vm0, %v615_v24, 0.0  ;;  %v56_v27 = vsel %vm34_vm0, %v616_v25, 0.0  ;;  %684 = vmatprep.subr.mxu1 %v264_v28 }
   0x9   :  { %663 = vmatpush3.msra.mxu0 %v787_v6  ;;  %685 = vmatpush3.msra.mxu1 %v264_v28 }
   0xa   :  { %664 = vmatprep.subr.mxu0 %v796_v10  ;;  %39 = vadd.xlane.f32.xlu0 %v38_v14 }
   0xb   :  { %665 = vmatpush3.msra.mxu0 %v796_v10  ;;  %45 = vadd.xlane.f32.xlu1 %v44_v16 }
   0xc   :  { %666 = vmatprep.subr.mxu0 %v808_v15  ;;  %686 = vmatprep.subr.mxu1 %v263_v29 }
   0xd   :  { %667 = vmatpush3.msra.mxu0 %v808_v15  ;;  %687 = vmatpush3.msra.mxu1 %v263_v29 }
   0xe   :  { %668 = vmatprep.subr.mxu0 %v816_v18  ;;  %48 = vadd.xlane.f32.xlu0 %v47_v21 }
   0xf   :  { %669 = vmatpush3.msra.mxu0 %v816_v18  ;;  %51 = vadd.xlane.f32.xlu1 %v50_v23 }
  0x10   :  { %670 = vmatprep.subr.mxu0 %v827_v22  ;;  %700 = vmatprep.subr.mxu1 %v262_v30 }
  0x11   :  { %671 = vmatpush3.msra.mxu0 %v827_v22 }
  0x12   :  { %673 = vmatmul.mubr.msk.f32.vlgmr.msra.gmra.mxu0 %vm34_vm0, %v604_v8  ;;  %54 = vadd.xlane.f32.xlu0 %v53_v26  ;;  %v733_v26 = vmov 0.0  }
  0x13   :  { %675 = vmatprep.mubr.msk.f32.mxu0 %vm34_vm0, %v607_v7  ;;  %57 = vadd.xlane.f32.xlu1 %v56_v27 }
  0x16   :  { %676 = vmatmul.mubr.msk.f32.gmra.mxu0 %vm34_vm0, %v608_v11 }
  0x17   :  { %678 = vmatprep.mubr.msk.f32.mxu0 %vm34_vm0, %v611_v17 }
  0x1a   :  { %679 = vmatmul.mubr.msk.f32.gmra.mxu0 %vm34_vm0, %v612_v19 }
  0x1b   :  { %681 = vmatprep.mubr.msk.f32.mxu0 %vm34_vm0, %v615_v24 }
  0x1e   :  { %682 = vmatmul.mubr.msk.f32.gmra.mxu0 %vm34_vm0, %v616_v25 }
  0x8f   :  { %v852_v31 = vpop.xlane.xlu0 %36 }
  0x90   :  { %v854_v32 = vpop.xlane.xlu1 %42  ;;  %v83_v36 = vmax.f32 %v852_v31, 1.0  ;;  %vm59_vm3 = vcmp.gt.f32.partialorder %v852_v31, 0.0 }
  0x91   :  { %v85_v40 = vmax.f32 %v854_v32, 1.0  ;;  %vm61_vm6 = vcmp.gt.f32.partialorder %v854_v32, 0.0 }
  0x93   :  { %v856_v33 = vpop.xlane.xlu0 %39 }
  0x94   :  { %v858_v34 = vpop.xlane.xlu1 %45  ;;  %v84_v35 = vmax.f32 %v856_v33, 1.0  ;;  %vm60_vm2 = vcmp.gt.f32.partialorder %v856_v33, 0.0 }
  0x95   :  { %v86_v39 = vmax.f32 %v858_v34, 1.0  ;;  %v569_v27 = vsel %vm60_vm2, 1.0, %v733_v26  ;;  %vm62_vm4 = vcmp.gt.f32.partialorder %v858_v34, 0.0 }
  0x96   :  { %717 = vrcp.f32 %v84_v35 }
  0x97   :  { %v862_v37 = vpop.xlane.xlu0 %48  ;;  %719 = vrcp.f32 %v83_v36 }
  0x98   :  { %v864_v38 = vpop.xlane.xlu1 %51  ;;  %v87_v41 = vmax.f32 %v862_v37, 1.0  ;;  %721 = vrcp.f32 %v86_v39  ;;  %v568_v39 = vsel %vm59_vm3, 1.0, %v733_v26  ;;  %vm63_vm8 = vcmp.gt.f32.partialorder %v862_v37, 0.0 }
  0x99   :  { %v88_v42 = vmax.f32 %v864_v38, 1.0  ;;  %723 = vrcp.f32 %v85_v40  ;;  %vm64_vm7 = vcmp.gt.f32.partialorder %v864_v38, 0.0 }
  0x9a   :  { %725 = vrcp.f32 %v87_v41 }
  0x9b   :  { %v870_v43 = vpop.xlane.xlu0 %54  ;;  %727 = vrcp.f32 %v88_v42 }
  0x9c   :  { %v872_v44 = vpop.xlane.xlu1 %57  ;;  %v89_v45 = vmax.f32 %v870_v43, 1.0  ;;  %vm65_vm10 = vcmp.gt.f32.partialorder %v870_v43, 0.0 }
  0x9d   :  { %v90_v46 = vmax.f32 %v872_v44, 1.0  ;;  %vm66_vm9 = vcmp.gt.f32.partialorder %v872_v44, 0.0 }
  0x9e   :  { %729 = vrcp.f32 %v89_v45  ;;  %v571_v45 = vsel %vm62_vm4, 1.0, %v733_v26 }
  0x9f   :  { %731 = vrcp.f32 %v90_v46 }
  0xa3   :  { %v718_v48 = vpop.eup %717 }
  0xa4   :  { %v720_v49 = vpop.eup %719 }
  0xa5   :  { %v722_v54 = vpop.eup %721 }
  0xa6   :  { %v724_v56 = vpop.eup %723 }
  0xa7   :  { %v726_v59 = vpop.eup %725 }
  0xa8   :  { %v728_v62 = vpop.eup %727 }
  0xab   :  { %v730_v4 = vpop.eup %729 }
  0xac   :  { %v732_v8 = vpop.eup %731 }
  0xd2   :  { %v674_v47 = vpop.f32.mrf.mxu0 }
  0xd3   :  { %v245_v52 = vmul.f32 %v718_v48, %v674_v47 }
  0xd4   :  { %v205_v50 = vpop.f32.mrf.mxu0 }
  0xd5   :  { %v244_v51 = vmul.f32 %v720_v49, %v205_v50  ;;  %v570_v50 = vsel %vm61_vm6, 1.0, %v733_v26 }
  0xd6   :  { %v677_v53 = vpop.f32.mrf.mxu0 }
  0xd7   :  { %688 = vmatprep.mubr.msk.f32.mxu1 %vm265_vm1, %v244_v51  ;;  %v247_v60 = vmul.f32 %v722_v54, %v677_v53  ;;  %v573_v54 = vsel %vm64_vm7, 1.0, %v733_v26 }
  0xd8   :  { %v215_v57 = vpop.f32.mrf.mxu0  ;;  %689 = vmatmul.mubr.msk.f32.vlgmr.msra.gmra.mxu1 %vm265_vm1, %v245_v52 }
  0xd9   :  { %v246_v58 = vmul.f32 %v724_v56, %v215_v57  ;;  %701 = vmatpush3.msra.mxu1 %v262_v30 }
  0xda   :  { %v680_v61 = vpop.f32.mrf.mxu0  ;;  %702 = vmatprep.subr.mxu1 %v261_v55 }
  0xdb   :  { %691 = vmatprep.mubr.msk.f32.mxu1 %vm265_vm1, %v246_v58  ;;  %703 = vmatpush3.msra.mxu1 %v261_v55  ;;  %v249_v5 = vmul.f32 %v728_v62, %v680_v61  ;;  %v575_v62 = vsel %vm66_vm9, 1.0, %v733_v26 }
  0xdc   :  { %v225_v63 = vpop.f32.mrf.mxu0  ;;  %692 = vmatmul.mubr.msk.f32.gmra.mxu1 %vm265_vm1, %v247_v60 }
  0xdd   :  { %v248_v3 = vmul.f32 %v726_v59, %v225_v63  ;;  %v572_v59 = vsel %vm63_vm8, 1.0, %v733_v26 }
  0xde   :  { %v683_v7 = vpop.f32.mrf.mxu0 }
  0xdf   :  { %694 = vmatprep.mubr.msk.f32.mxu1 %vm265_vm1, %v248_v3  ;;  %v251_v12 = vmul.f32 %v732_v8, %v683_v7 }
  0xe0   :  { %v235_v9 = vpop.f32.mrf.mxu0  ;;  %695 = vmatmul.mubr.msk.f32.gmra.mxu1 %vm265_vm1, %v249_v5 }
  0xe1   :  { %v250_v11 = vmul.f32 %v730_v4, %v235_v9  ;;  %v574_v4 = vsel %vm65_vm10, 1.0, %v733_v26 }
  0xe3   :  { %697 = vmatprep.mubr.msk.f32.mxu1 %vm265_vm1, %v250_v11 }
  0xe4   :  { %698 = vmatmul.mubr.msk.f32.gmra.mxu1 %vm265_vm1, %v251_v12 }
  0xe5   :  { %704 = vmatprep.mubr.msk.f32.mxu1 %vm265_vm1, %v827_v22 }
  0xe8   :  { %705 = vmatmul.mubr.msk.f32.vlgmr.msra.gmra.mxu1 %vm265_vm1, %v816_v18 }
  0xe9   :  { %707 = vmatprep.mubr.msk.f32.mxu1 %vm265_vm1, %v808_v15 }
  0xec   :  { %708 = vmatmul.mubr.msk.f32.gmra.mxu1 %vm265_vm1, %v796_v10 }
  0xed   :  { %710 = vmatprep.mubr.msk.f32.mxu1 %vm265_vm1, %v787_v6  ;;  %v600_v6 = vld [vmem:[%s951_s3] ss:$0 sm:$0xff] }
  0xf0   :  { %711 = vmatmul.mubr.msk.f32.gmra.mxu1 %vm265_vm1, %v774_v2 }
  0xf1   :  { %713 = vmatprep.mubr.msk.f32.mxu1 %vm265_vm1, %v767_v1 }
  0xf4   :  { %714 = vmatmul.mubr.msk.f32.gmra.mxu1 %vm265_vm1, %v762_v0 }
 0x198   :  { %v690_v13 = vpop.f32.mrf.mxu1 }
 0x19a   :  { %v356_v14 = vpop.f32.mrf.mxu1 }
 0x19c   :  { %v693_v16 = vpop.f32.mrf.mxu1 }
 0x19e   :  { %v366_v17 = vpop.f32.mrf.mxu1 }
 0x1a0   :  { %v696_v15 = vpop.f32.mrf.mxu1 }
 0x1a2   :  { %v376_v18 = vpop.f32.mrf.mxu1 }
 0x1a4   :  { %v699_v19 = vpop.f32.mrf.mxu1 }
 0x1a6   :  { %v386_v10 = vpop.f32.mrf.mxu1 }
 0x1a8   :  { %v706_v20 = vpop.f32.mrf.mxu1 }
 0x1a9   :  { %v491_v2 = vadd.f32 %v706_v20, %v690_v13 }
 0x1aa   :  { %v485_v21 = vpop.f32.mrf.mxu1 }
 0x1ab   :  { %v532_v1 = vadd.f32 %v600_v6, %v491_v2  ;;  %v486_v22 = vadd.f32 %v485_v21, %v356_v14 }
 0x1ac   :  { %v709_v0 = vpop.f32.mrf.mxu1 }
 0x1ad   :  { %v540_v23 = vmax.f32 %v532_v1, 0.0  ;;  %v531_v24 = vadd.f32 %v600_v6, %v486_v22  ;;  %v501_v25 = vadd.f32 %v709_v0, %v693_v16 }
 0x1ae   :  { %v495_v28 = vpop.f32.mrf.mxu1 }
 0x1af   :  { %v548_v29 = vmul.f32 %v569_v27, %v540_v23  ;;  %v539_v30 = vmax.f32 %v531_v24, 0.0  ;;  %v534_v35 = vadd.f32 %v600_v6, %v501_v25  ;;  %v496_v36 = vadd.f32 %v495_v28, %v366_v17 }
 0x1b0   :  { %v712_v33 = vpop.f32.mrf.mxu1 }
 0x1b1   :  { %557 = vst.msk [vmem:[%s952_s4 + $0x8] sm:$0xff] %vm555_vm5, %v548_v29  ;;  %v547_v31 = vmul.f32 %v568_v39, %v539_v30  ;;  %v542_v40 = vmax.f32 %v534_v35, 0.0  ;;  %v533_v41 = vadd.f32 %v600_v6, %v496_v36  ;;  %v511_v42 = vadd.f32 %v712_v33, %v696_v15 }
 0x1b2   :  { %v505_v46 = vpop.f32.mrf.mxu1 }
 0x1b3   :  { %556 = vst.msk [vmem:[%s952_s4] sm:$0xff] %vm555_vm5, %v547_v31  ;;  %v550_v32 = vmul.f32 %v571_v45, %v542_v40  ;;  %v541_v47 = vmax.f32 %v533_v41, 0.0  ;;  %v536_v48 = vadd.f32 %v600_v6, %v511_v42  ;;  %v506_v49 = vadd.f32 %v505_v46, %v376_v18 }
 0x1b4   :  { %v715_v51 = vpop.f32.mrf.mxu1 }
 0x1b5   :  { %559 = vst.msk [vmem:[%s952_s4 + $0x18] sm:$0xff] %vm555_vm5, %v550_v32  ;;  %v549_v34 = vmul.f32 %v570_v50, %v541_v47  ;;  %v544_v38 = vmax.f32 %v536_v48, 0.0  ;;  %v535_v52 = vadd.f32 %v600_v6, %v506_v49  ;;  %v521_v53 = vadd.f32 %v715_v51, %v699_v19 }
 0x1b6   :  { %v515_v55 = vpop.f32.mrf.mxu1 }
 0x1b7   :  { %558 = vst.msk [vmem:[%s952_s4 + $0x10] sm:$0xff] %vm555_vm5, %v549_v34  ;;  %v552_v37 = vmul.f32 %v573_v54, %v544_v38  ;;  %v543_v56 = vmax.f32 %v535_v52, 0.0  ;;  %v538_v57 = vadd.f32 %v600_v6, %v521_v53  ;;  %v516_v58 = vadd.f32 %v515_v55, %v386_v10 }
 0x1b9   :  { %561 = vst.msk [vmem:[%s952_s4 + $0x28] sm:$0xff] %vm555_vm5, %v552_v37  ;;  %v551_v60 = vmul.f32 %v572_v59, %v543_v56  ;;  %v546_v44 = vmax.f32 %v538_v57, 0.0  ;;  %v537_v61 = vadd.f32 %v600_v6, %v516_v58 }
 0x1bb   :  { %560 = vst.msk [vmem:[%s952_s4 + $0x20] sm:$0xff] %vm555_vm5, %v551_v60  ;;  %v554_v63 = vmul.f32 %v575_v62, %v546_v44  ;;  %v545_v3 = vmax.f32 %v537_v61, 0.0 }
 0x1bd   :  { %563 = vst.msk [vmem:[%s952_s4 + $0x38] sm:$0xff] %vm555_vm5, %v554_v63  ;;  %v553_v43 = vmul.f32 %v574_v4, %v545_v3 }
 0x1bf   :  { %562 = vst.msk [vmem:[%s952_s4 + $0x30] sm:$0xff] %vm555_vm5, %v553_v43 }

// kernel: edge_gnn_forward.3
= control target key start
LH: loop header
LB: loop body
LE: loop exit
PB: predicated region body
PF: predicated region fallthrough
CT: control target
= control target key end

     0   :  { %vm43_vm0 = vcmask 523264   ;;  %vm278_vm1 = vcmask 261120   ;;  %vm688_vm2 = vcmask 130048   ;;  %s1627_s1 = inlined_call_operand.vmem [shape: f32[64,32], index: 1, kind: input, shape index: {}]   ;;  %s1628_s2 = inlined_call_operand.vmem [shape: bf16[64,64], index: 2, kind: input, shape index: {}]   ;;  %s1629_s3 = inlined_call_operand.vmem [shape: f32[64,32], index: 3, kind: input, shape index: {}]   ;;  %s1630_s5 = inlined_call_operand.vmem [shape: f32[80,32], index: 5, kind: input, shape index: {}]   ;;  %s1631_s0 = inlined_call_operand.vmem [shape: f32[64,16], index: 0, kind: input, shape index: {}]   ;;  %s1632_s4 = inlined_call_operand.vmem [shape: f32[1,32], index: 4, kind: input, shape index: {}]   ;;  %s1633_s6 = inlined_call_operand.vmem [shape: f32[1,32], index: 6, kind: input, shape index: {}]   ;;  %s1634_s7 = inlined_call_operand.vmem [shape: f32[64,32], index: 7, kind: output, shape index: {}]  }
   0x1   :  { %v1330_v0 = vld [vmem:[%s1627_s1 + $0x38] sm:$0xff]  ;;  %v1335_v1 = vld [vmem:[%s1627_s1 + $0x30] sm:$0xff]  ;;  %v1342_v2 = vld [vmem:[%s1627_s1 + $0x28] sm:$0xff] }
   0x2   :  { %1137 = vmatprep.subr.mxu0 %v1330_v0  ;;  %v1045_v3 = vld [vmem:[%s1628_s2] sm:$0xff]   ;;  %v1060_v5 = vld [vmem:[%s1628_s2 + $0x8] sm:$0xff]   ;;  %v1364_v10 = vld [vmem:[%s1627_s1 + $0x18] sm:$0xff] }
   0x3   :  { %1138 = vmatpush3.msra.mxu0 %v1330_v0  ;;  %v1046_v4 = vunpack.c.l.bf16 %v1045_v3  ;;  %v1355_v6 = vld [vmem:[%s1627_s1 + $0x20] sm:$0xff]  ;;  %v1050_v7 = vunpack.c.l.bf16 %v1060_v5  ;;  %v1047_v8 = vunpack.c.h.bf16 %v1045_v3  ;;  %v1051_v11 = vunpack.c.h.bf16 %v1060_v5  ;;  %v1061_v12 = vld [vmem:[%s1628_s2 + $0x10] sm:$0xff]   ;;  %v1384_v18 = vld [vmem:[%s1627_s1 + $0x8] sm:$0xff] }
   0x4   :  { %1139 = vmatprep.subr.mxu0 %v1335_v1  ;;  %v1376_v15 = vld [vmem:[%s1627_s1 + $0x10] sm:$0xff]  ;;  %v1054_v17 = vunpack.c.l.bf16 %v1061_v12  ;;  %v1055_v19 = vunpack.c.h.bf16 %v1061_v12  ;;  %v1062_v20 = vld [vmem:[%s1628_s2 + $0x18] sm:$0xff]   ;;  %v1395_v22 = vld [vmem:[%s1627_s1] sm:$0xff] }
   0x5   :  { %1140 = vmatpush3.msra.mxu0 %v1335_v1  ;;  %1153 = vmatprep.mubr.msk.f32.mxu0 %vm43_vm0, %v1046_v4  ;;  %v44_v9 = vsel %vm43_vm0, %v1046_v4, 0.0  ;;  %v50_v13 = vsel %vm43_vm0, %v1050_v7, 0.0  ;;  %v47_v14 = vsel %vm43_vm0, %v1047_v8, 0.0  ;;  %v53_v16 = vsel %vm43_vm0, %v1051_v11, 0.0  ;;  %v277_v28 = vld [vmem:[%s1629_s3 + $0x38] sm:$0xff]  ;;  %v276_v29 = vld [vmem:[%s1629_s3 + $0x30] sm:$0xff] }
   0x6   :  { %1141 = vmatprep.subr.mxu0 %v1342_v2  ;;  %45 = vadd.xlane.f32.xlu0 %v44_v9  ;;  %v56_v21 = vsel %vm43_vm0, %v1054_v17, 0.0  ;;  %v59_v23 = vsel %vm43_vm0, %v1055_v19, 0.0  ;;  %v1058_v24 = vunpack.c.l.bf16 %v1062_v20  ;;  %v1059_v25 = vunpack.c.h.bf16 %v1062_v20  ;;  %v275_v30 = vld [vmem:[%s1629_s3 + $0x28] sm:$0xff]  ;;  %v274_v31 = vld [vmem:[%s1629_s3 + $0x20] sm:$0xff]  ;;  %v273_v32 = vld [vmem:[%s1629_s3 + $0x18] sm:$0xff] }
   0x7   :  { %1142 = vmatpush3.msra.mxu0 %v1342_v2  ;;  %51 = vadd.xlane.f32.xlu1 %v50_v13  ;;  %v1431_v33 = vld [vmem:[%s1630_s5 + $0x28] sm:$0xff]  ;;  %v1437_v34 = vld [vmem:[%s1630_s5 + $0x20] sm:$0xff]  ;;  %v272_v59 = vld [vmem:[%s1629_s3 + $0x10] sm:$0xff] }
   0x8   :  { %1143 = vmatprep.subr.mxu0 %v1355_v6  ;;  %v62_v26 = vsel %vm43_vm0, %v1058_v24, 0.0  ;;  %v65_v27 = vsel %vm43_vm0, %v1059_v25, 0.0  ;;  %1165 = vmatprep.subr.mxu1 %v277_v28  ;;  %v271_v63 = vld [vmem:[%s1629_s3 + $0x8] sm:$0xff] }
   0x9   :  { %1144 = vmatpush3.msra.mxu0 %v1355_v6  ;;  %1166 = vmatpush3.msra.mxu1 %v277_v28  ;;  %v819_v28 = vld [vmem:[%s1630_s5 + $0x38] sm:$0xff] }
   0xa   :  { %1145 = vmatprep.subr.mxu0 %v1364_v10  ;;  %48 = vadd.xlane.f32.xlu0 %v47_v14 }
   0xb   :  { %1146 = vmatpush3.msra.mxu0 %v1364_v10  ;;  %54 = vadd.xlane.f32.xlu1 %v53_v16 }
   0xc   :  { %1147 = vmatprep.subr.mxu0 %v1376_v15  ;;  %1167 = vmatprep.subr.mxu1 %v276_v29 }
   0xd   :  { %1148 = vmatpush3.msra.mxu0 %v1376_v15  ;;  %1168 = vmatpush3.msra.mxu1 %v276_v29  ;;  %v818_v29 = vld [vmem:[%s1630_s5 + $0x30] sm:$0xff] }
   0xe   :  { %1149 = vmatprep.subr.mxu0 %v1384_v18  ;;  %57 = vadd.xlane.f32.xlu0 %v56_v21  ;;  %v580_v21 = vld [vmem:[%s1630_s5 + $0x18] sm:$0xff] }
   0xf   :  { %1150 = vmatpush3.msra.mxu0 %v1384_v18  ;;  %60 = vadd.xlane.f32.xlu1 %v59_v23  ;;  %v578_v23 = vld [vmem:[%s1630_s5 + $0x8] sm:$0xff] }
  0x10   :  { %1151 = vmatprep.subr.mxu0 %v1395_v22  ;;  %1169 = vmatprep.subr.mxu1 %v275_v30 }
  0x11   :  { %1152 = vmatpush3.msra.mxu0 %v1395_v22  ;;  %1170 = vmatpush3.msra.mxu1 %v275_v30 }
  0x12   :  { %1154 = vmatmul.mubr.msk.f32.vlgmr.msra.gmra.mxu0 %vm43_vm0, %v1047_v8  ;;  %63 = vadd.xlane.f32.xlu0 %v62_v26  ;;  %v270_v8 = vld [vmem:[%s1629_s3] sm:$0xff]  ;;  %v576_v26 = vld [vmem:[%s1631_s0 + $0x38] sm:$0xff] }
  0x13   :  { %1156 = vmatprep.mubr.msk.f32.mxu0 %vm43_vm0, %v1050_v7  ;;  %66 = vadd.xlane.f32.xlu1 %v65_v27  ;;  %v820_v27 = vld [vmem:[%s1630_s5 + $0x40] sm:$0xff] }
  0x14   :  { %1171 = vmatprep.subr.mxu1 %v274_v31  ;;  %1205 = vmatprep.subr.mxu0 %v1431_v33 }
  0x15   :  { %1172 = vmatpush3.msra.mxu1 %v274_v31  ;;  %1206 = vmatpush3.msra.mxu0 %v1431_v33 }
  0x16   :  { %1157 = vmatmul.mubr.msk.f32.gmra.mxu0 %vm43_vm0, %v1051_v11  ;;  %1185 = vmatprep.subr.mxu1 %v273_v32 }
  0x17   :  { %1159 = vmatprep.mubr.msk.f32.mxu0 %vm43_vm0, %v1054_v17  ;;  %1207 = vmatprep.subr.mxu0 %v1437_v34 }
  0x18   :  { %1208 = vmatpush3.msra.mxu0 %v1437_v34 }
  0x19   :  { %1209 = vmatprep.subr.mxu0 %v580_v21 }
  0x1a   :  { %1160 = vmatmul.mubr.msk.f32.gmra.mxu0 %vm43_vm0, %v1055_v19 }
  0x1b   :  { %1162 = vmatprep.mubr.msk.f32.mxu0 %vm43_vm0, %v1058_v24  ;;  %1210 = vmatpush3.msra.mxu0 %v580_v21  ;;  %v569_v24 = vld [vmem:[%s1631_s0] sm:$0xff] }
  0x1e   :  { %1163 = vmatmul.mubr.msk.f32.gmra.mxu0 %vm43_vm0, %v1059_v25  ;;  %v821_v25 = vld [vmem:[%s1630_s5 + $0x48] sm:$0xff] }
  0x1f   :  { %1213 = vmatprep.mubr.msk.f32.mxu0 %vm278_vm1, %v1395_v22 }
  0x8f   :  { %v1442_v35 = vpop.xlane.xlu0 %45 }
  0x90   :  { %v1444_v36 = vpop.xlane.xlu1 %51  ;;  %v92_v40 = vmax.f32 %v1442_v35, 1.0  ;;  %vm68_vm3 = vcmp.gt.f32.partialorder %v1442_v35, 0.0 }
  0x91   :  { %v94_v44 = vmax.f32 %v1444_v36, 1.0  ;;  %vm70_vm5 = vcmp.gt.f32.partialorder %v1444_v36, 0.0 }
  0x93   :  { %v1446_v37 = vpop.xlane.xlu0 %48 }
  0x94   :  { %v1448_v38 = vpop.xlane.xlu1 %54  ;;  %v93_v39 = vmax.f32 %v1446_v37, 1.0  ;;  %vm69_vm4 = vcmp.gt.f32.partialorder %v1446_v37, 0.0 }
  0x95   :  { %v95_v43 = vmax.f32 %v1448_v38, 1.0  ;;  %vm71_vm6 = vcmp.gt.f32.partialorder %v1448_v38, 0.0 }
  0x96   :  { %1270 = vrcp.f32 %v93_v39 }
  0x97   :  { %v1452_v41 = vpop.xlane.xlu0 %57  ;;  %1272 = vrcp.f32 %v92_v40 }
  0x98   :  { %v1454_v42 = vpop.xlane.xlu1 %60  ;;  %v96_v45 = vmax.f32 %v1452_v41, 1.0  ;;  %1274 = vrcp.f32 %v95_v43  ;;  %vm72_vm7 = vcmp.gt.f32.partialorder %v1452_v41, 0.0 }
  0x99   :  { %v97_v46 = vmax.f32 %v1454_v42, 1.0  ;;  %1276 = vrcp.f32 %v94_v44  ;;  %vm73_vm8 = vcmp.gt.f32.partialorder %v1454_v42, 0.0 }
  0x9a   :  { %1278 = vrcp.f32 %v96_v45  ;;  %v1018_v45 = vld [vmem:[%s1632_s4] ss:$0 sm:$0xff] }
  0x9b   :  { %v1460_v47 = vpop.xlane.xlu0 %63  ;;  %1280 = vrcp.f32 %v97_v46 }
  0x9c   :  { %v1462_v48 = vpop.xlane.xlu1 %66  ;;  %v98_v49 = vmax.f32 %v1460_v47, 1.0  ;;  %vm74_vm9 = vcmp.gt.f32.partialorder %v1460_v47, 0.0 }
  0x9d   :  { %v99_v50 = vmax.f32 %v1462_v48, 1.0  ;;  %vm75_vm10 = vcmp.gt.f32.partialorder %v1462_v48, 0.0 }
  0x9e   :  { %1282 = vrcp.f32 %v98_v49 }
  0x9f   :  { %1284 = vrcp.f32 %v99_v50 }
  0xa3   :  { %v1271_v52 = vpop.eup %1270 }
  0xa4   :  { %v1273_v53 = vpop.eup %1272 }
  0xa5   :  { %v1275_v58 = vpop.eup %1274 }
  0xa6   :  { %v1277_v60 = vpop.eup %1276 }
  0xa7   :  { %v1279_v3 = vpop.eup %1278 }
  0xa8   :  { %v1281_v7 = vpop.eup %1280 }
  0xab   :  { %v1283_v12 = vpop.eup %1282 }
  0xac   :  { %v1285_v16 = vpop.eup %1284 }
  0xd2   :  { %v1155_v51 = vpop.f32.mrf.mxu0 }
  0xd3   :  { %v254_v56 = vmul.f32 %v1271_v52, %v1155_v51 }
  0xd4   :  { %v214_v54 = vpop.f32.mrf.mxu0 }
  0xd5   :  { %v253_v55 = vmul.f32 %v1273_v53, %v214_v54 }
  0xd6   :  { %v1158_v57 = vpop.f32.mrf.mxu0 }
  0xd7   :  { %1173 = vmatprep.mubr.msk.f32.mxu1 %vm278_vm1, %v253_v55  ;;  %v256_v4 = vmul.f32 %v1275_v58, %v1158_v57 }
  0xd8   :  { %v224_v61 = vpop.f32.mrf.mxu0  ;;  %1174 = vmatmul.mubr.msk.f32.vlgmr.msra.gmra.mxu1 %vm278_vm1, %v254_v56 }
  0xd9   :  { %v255_v62 = vmul.f32 %v1277_v60, %v224_v61  ;;  %1186 = vmatpush3.msra.mxu1 %v273_v32  ;;  %v1286_v60 = vmov 0.0  }
  0xda   :  { %v1161_v5 = vpop.f32.mrf.mxu0  ;;  %1187 = vmatprep.subr.mxu1 %v272_v59  ;;  %v986_v61 = vsel %vm68_vm3, 1.0, %v1286_v60 }
  0xdb   :  { %1176 = vmatprep.mubr.msk.f32.mxu1 %vm278_vm1, %v255_v62  ;;  %1188 = vmatpush3.msra.mxu1 %v272_v59  ;;  %v258_v13 = vmul.f32 %v1281_v7, %v1161_v5  ;;  %v987_v62 = vsel %vm69_vm4, 1.0, %v1286_v60 }
  0xdc   :  { %v234_v9 = vpop.f32.mrf.mxu0  ;;  %1177 = vmatmul.mubr.msk.f32.gmra.mxu1 %vm278_vm1, %v256_v4  ;;  %1189 = vmatprep.subr.mxu1 %v271_v63 }
  0xdd   :  { %v257_v11 = vmul.f32 %v1279_v3, %v234_v9  ;;  %1190 = vmatpush3.msra.mxu1 %v271_v63 }
  0xde   :  { %v1164_v14 = vpop.f32.mrf.mxu0  ;;  %1191 = vmatprep.subr.mxu1 %v270_v8 }
  0xdf   :  { %1179 = vmatprep.mubr.msk.f32.mxu1 %vm278_vm1, %v257_v11  ;;  %1192 = vmatpush3.msra.mxu1 %v270_v8  ;;  %v260_v20 = vmul.f32 %v1285_v16, %v1164_v14 }
  0xe0   :  { %v244_v17 = vpop.f32.mrf.mxu0  ;;  %1180 = vmatmul.mubr.msk.f32.gmra.mxu1 %vm278_vm1, %v258_v13  ;;  %1261 = vmatprep.subr.mxu1 %v1431_v33  ;;  %v989_v13 = vsel %vm71_vm6, 1.0, %v1286_v60 }
  0xe1   :  { %v259_v19 = vmul.f32 %v1283_v12, %v244_v17  ;;  %v988_v12 = vsel %vm70_vm5, 1.0, %v1286_v60 }
  0xe3   :  { %1182 = vmatprep.mubr.msk.f32.mxu1 %vm278_vm1, %v259_v19 }
  0xe4   :  { %1183 = vmatmul.mubr.msk.f32.gmra.mxu1 %vm278_vm1, %v260_v20 }
  0xe5   :  { %1193 = vmatprep.mubr.msk.f32.mxu1 %vm278_vm1, %v1395_v22  ;;  %v579_v22 = vld [vmem:[%s1630_s5 + $0x10] sm:$0xff] }
  0xe6   :  { %1211 = vmatprep.subr.mxu0 %v579_v22 }
  0xe7   :  { %1212 = vmatpush3.msra.mxu0 %v579_v22 }
  0xe8   :  { %1194 = vmatmul.mubr.msk.f32.vlgmr.msra.gmra.mxu1 %vm278_vm1, %v1384_v18  ;;  %1214 = vmatmul.mubr.msk.f32.vlgmr.msra.gmra.mxu0 %vm278_vm1, %v1384_v18  ;;  %v571_v18 = vld [vmem:[%s1631_s0 + $0x10] sm:$0xff] }
  0xe9   :  { %1196 = vmatprep.mubr.msk.f32.mxu1 %vm278_vm1, %v1376_v15  ;;  %1265 = vmatpush3.msra.mxu1 %v1431_v33 }
  0xea   :  { %1262 = vmatprep.subr.mxu1 %v1437_v34  ;;  %1216 = vmatprep.mubr.msk.f32.mxu0 %vm278_vm1, %v1376_v15  ;;  %v572_v15 = vld [vmem:[%s1631_s0 + $0x18] sm:$0xff] }
  0xeb   :  { %1266 = vmatpush3.msra.mxu1 %v1437_v34  ;;  %1241 = vmatprep.subr.mxu0 %v821_v25 }
  0xec   :  { %1197 = vmatmul.mubr.msk.f32.gmra.mxu1 %vm278_vm1, %v1364_v10  ;;  %1263 = vmatprep.subr.mxu1 %v580_v21 }
  0xed   :  { %1199 = vmatprep.mubr.msk.f32.mxu1 %vm278_vm1, %v1355_v6  ;;  %1267 = vmatpush3.msra.mxu1 %v580_v21 }
  0xee   :  { %1264 = vmatprep.subr.mxu1 %v579_v22  ;;  %1217 = vmatmul.mubr.msk.f32.gmra.mxu0 %vm278_vm1, %v1364_v10  ;;  %v573_v10 = vld [vmem:[%s1631_s0 + $0x20] sm:$0xff] }
  0xef   :  { %1268 = vmatpush3.msra.mxu1 %v579_v22  ;;  %1219 = vmatprep.mubr.msk.f32.mxu0 %vm278_vm1, %v1355_v6  ;;  %v574_v6 = vld [vmem:[%s1631_s0 + $0x28] sm:$0xff] }
  0xf0   :  { %1200 = vmatmul.mubr.msk.f32.gmra.mxu1 %vm278_vm1, %v1342_v2  ;;  %1225 = vmatprep.subr.mxu1 %v578_v23 }
  0xf1   :  { %1202 = vmatprep.mubr.msk.f32.mxu1 %vm278_vm1, %v1335_v1  ;;  %1242 = vmatpush3.msra.mxu0 %v821_v25  ;;  %v993_v25 = vsel %vm75_vm10, 1.0, %v1286_v60 }
  0xf2   :  { %1220 = vmatmul.mubr.msk.f32.gmra.mxu0 %vm278_vm1, %v1342_v2  ;;  %v575_v2 = vld [vmem:[%s1631_s0 + $0x30] sm:$0xff]  ;;  %1243 = vmatprep.subr.mxu0 %v820_v27 }
  0xf3   :  { %1244 = vmatpush3.msra.mxu0 %v820_v27 }
  0xf4   :  { %1203 = vmatmul.mubr.msk.f32.gmra.mxu1 %vm278_vm1, %v1330_v0  ;;  %1245 = vmatprep.subr.mxu0 %v819_v28 }
  0xf5   :  { %1222 = vmatprep.mubr.msk.f32.mxu1 %vm278_vm1, %v1335_v1  ;;  %v577_v1 = vld [vmem:[%s1630_s5] sm:$0xff]  ;;  %1246 = vmatpush3.msra.mxu0 %v819_v28 }
  0xf6   :  { %1247 = vmatprep.subr.mxu0 %v818_v29 }
  0xf7   :  { %1248 = vmatpush3.msra.mxu0 %v818_v29 }
  0xf8   :  { %1223 = vmatmul.mubr.msk.f32.vlgmr.msra.gmra.mxu1 %vm278_vm1, %v1330_v0  ;;  %v570_v0 = vld [vmem:[%s1631_s0 + $0x8] sm:$0xff] }
  0xf9   :  { %1226 = vmatpush3.msra.mxu1 %v578_v23  ;;  %1229 = vmatprep.mubr.msk.f32.mxu1 %vm688_vm2, %v569_v24  ;;  %v991_v24 = vsel %vm73_vm8, 1.0, %v1286_v60 }
  0xfa   :  { %1227 = vmatprep.subr.mxu1 %v577_v1 }
  0xfb   :  { %1228 = vmatpush3.msra.mxu1 %v577_v1  ;;  %v990_v1 = vsel %vm72_vm7, 1.0, %v1286_v60 }
  0xfc   :  { %1230 = vmatmul.mubr.msk.f32.vlgmr.msra.gmra.mxu1 %vm688_vm2, %v570_v0 }
  0xfd   :  { %1232 = vmatprep.mubr.msk.f32.mxu1 %vm688_vm2, %v571_v18 }
 0x100   :  { %1233 = vmatmul.mubr.msk.f32.gmra.mxu1 %vm688_vm2, %v572_v15 }
 0x101   :  { %1235 = vmatprep.mubr.msk.f32.mxu1 %vm688_vm2, %v573_v10  ;;  %v992_v10 = vsel %vm74_vm9, 1.0, %v1286_v60 }
 0x104   :  { %1236 = vmatmul.mubr.msk.f32.gmra.mxu1 %vm688_vm2, %v574_v6 }
 0x105   :  { %1238 = vmatprep.mubr.msk.f32.mxu1 %vm688_vm2, %v575_v2 }
 0x108   :  { %1239 = vmatmul.mubr.msk.f32.gmra.mxu1 %vm688_vm2, %v576_v26 }
 0x198   :  { %v1175_v30 = vpop.f32.mrf.mxu1 }
 0x19a   :  { %v369_v31 = vpop.f32.mrf.mxu1 }
 0x19c   :  { %v1178_v32 = vpop.f32.mrf.mxu1 }
 0x19e   :  { %v379_v33 = vpop.f32.mrf.mxu1 }
 0x1a0   :  { %v1181_v34 = vpop.f32.mrf.mxu1 }
 0x1a2   :  { %v389_v39 = vpop.f32.mrf.mxu1 }
 0x1a4   :  { %v1184_v40 = vpop.f32.mrf.mxu1 }
 0x1a6   :  { %v399_v43 = vpop.f32.mrf.mxu1 }
 0x1a8   :  { %v1195_v44 = vpop.f32.mrf.mxu1  ;;  %v1215_v27 = vpop.f32.mrf.mxu0 }
 0x1a9   :  { %v504_v46 = vadd.f32 %v1195_v44, %v1175_v30 }
 0x1aa   :  { %v498_v49 = vpop.f32.mrf.mxu1  ;;  %v649_v48 = vpop.f32.mrf.mxu0 }
 0x1ab   :  { %v545_v50 = vadd.f32 %v1018_v45, %v504_v46  ;;  %v499_v51 = vadd.f32 %v498_v49, %v369_v31 }
 0x1ac   :  { %v1198_v52 = vpop.f32.mrf.mxu1 }
 0x1ad   :  { %v544_v53 = vadd.f32 %v1018_v45, %v499_v51  ;;  %v514_v54 = vadd.f32 %v1198_v52, %v1178_v32  ;;  %v553_v55 = vmax.f32 %v545_v50, 0.0 }
 0x1ae   :  { %v508_v56 = vpop.f32.mrf.mxu1  ;;  %v1218_v30 = vpop.f32.mrf.mxu0 }
 0x1af   :  { %v552_v57 = vmax.f32 %v544_v53, 0.0  ;;  %v547_v58 = vadd.f32 %v1018_v45, %v514_v54  ;;  %v509_v59 = vadd.f32 %v508_v56, %v379_v33  ;;  %v561_v5 = vmul.f32 %v987_v62, %v553_v55 }
 0x1b0   :  { %v1201_v63 = vpop.f32.mrf.mxu1  ;;  %v659_v32 = vpop.f32.mrf.mxu0 }
 0x1b1   :  { %v560_v3 = vmul.f32 %v986_v61, %v552_v57  ;;  %v546_v4 = vadd.f32 %v1018_v45, %v509_v59  ;;  %v524_v35 = vadd.f32 %v1201_v63, %v1181_v34  ;;  %v555_v37 = vmax.f32 %v547_v58, 0.0 }
 0x1b2   :  { %v518_v7 = vpop.f32.mrf.mxu1  ;;  %v1221_v34 = vpop.f32.mrf.mxu0 }
 0x1b3   :  { %v554_v8 = vmax.f32 %v546_v4, 0.0  ;;  %v549_v9 = vadd.f32 %v1018_v45, %v524_v35  ;;  %v519_v11 = vadd.f32 %v518_v7, %v389_v39  ;;  %1249 = vmatprep.mubr.msk.f32.mxu0 %vm278_vm1, %v560_v3  ;;  %v563_v17 = vmul.f32 %v989_v13, %v555_v37 }
 0x1b4   :  { %v1204_v14 = vpop.f32.mrf.mxu1  ;;  %1250 = vmatmul.mubr.msk.f32.vlgmr.msra.gmra.mxu0 %vm278_vm1, %v561_v5 }
 0x1b5   :  { %v562_v36 = vmul.f32 %v988_v12, %v554_v8  ;;  %v548_v38 = vadd.f32 %v1018_v45, %v519_v11  ;;  %v534_v16 = vadd.f32 %v1204_v14, %v1184_v40  ;;  %v557_v19 = vmax.f32 %v549_v9, 0.0  ;;  %v669_v40 = vpop.f32.mrf.mxu0 }
 0x1b6   :  { %v528_v20 = vpop.f32.mrf.mxu1 }
 0x1b7   :  { %v556_v21 = vmax.f32 %v548_v38, 0.0  ;;  %v551_v22 = vadd.f32 %v1018_v45, %v534_v16  ;;  %v529_v23 = vadd.f32 %v528_v20, %v399_v43  ;;  %1252 = vmatprep.mubr.msk.f32.mxu0 %vm278_vm1, %v562_v36  ;;  %v565_v18 = vmul.f32 %v991_v24, %v557_v19 }
 0x1b8   :  { %1253 = vmatmul.mubr.msk.f32.gmra.mxu0 %vm278_vm1, %v563_v17  ;;  %v1224_v47 = vpop.f32.mrf.mxu1 }
 0x1b9   :  { %v564_v41 = vmul.f32 %v990_v1, %v556_v21  ;;  %v550_v0 = vadd.f32 %v1018_v45, %v529_v23  ;;  %v559_v42 = vmax.f32 %v551_v22, 0.0  ;;  %v1043_v45 = vld [vmem:[%s1633_s6] ss:$0 sm:$0xff] }
 0x1ba   :  { %v679_v26 = vpop.f32.mrf.mxu1 }
 0x1bb   :  { %v558_v15 = vmax.f32 %v550_v0, 0.0  ;;  %1255 = vmatprep.mubr.msk.f32.mxu0 %vm278_vm1, %v564_v41  ;;  %v567_v2 = vmul.f32 %v993_v25, %v559_v42 }
 0x1bc   :  { %1256 = vmatmul.mubr.msk.f32.gmra.mxu0 %vm278_vm1, %v565_v18  ;;  %v1231_v28 = vpop.f32.mrf.mxu1 }
 0x1bd   :  { %v566_v6 = vmul.f32 %v992_v10, %v558_v15  ;;  %v785_v43 = vadd.f32 %v1231_v28, %v1215_v27 }
 0x1be   :  { %v779_v29 = vpop.f32.mrf.mxu1 }
 0x1bf   :  { %1258 = vmatprep.mubr.msk.f32.mxu0 %vm278_vm1, %v566_v6  ;;  %v780_v46 = vadd.f32 %v779_v29, %v649_v48 }
 0x1c0   :  { %1259 = vmatmul.mubr.msk.f32.gmra.mxu0 %vm278_vm1, %v567_v2  ;;  %v1234_v31 = vpop.f32.mrf.mxu1 }
 0x1c1   :  { %v795_v52 = vadd.f32 %v1234_v31, %v1218_v30 }
 0x1c2   :  { %v789_v33 = vpop.f32.mrf.mxu1 }
 0x1c3   :  { %v790_v56 = vadd.f32 %v789_v33, %v659_v32 }
 0x1c4   :  { %v1237_v39 = vpop.f32.mrf.mxu1 }
 0x1c5   :  { %v805_v61 = vadd.f32 %v1237_v39, %v1221_v34 }
 0x1c6   :  { %v799_v50 = vpop.f32.mrf.mxu1 }
 0x1c7   :  { %v800_v4 = vadd.f32 %v799_v50, %v669_v40 }
 0x1c8   :  { %v1240_v59 = vpop.f32.mrf.mxu1 }
 0x1c9   :  { %v815_v8 = vadd.f32 %v1240_v59, %v1224_v47 }
 0x1ca   :  { %v809_v37 = vpop.f32.mrf.mxu1 }
 0x1cb   :  { %v810_v13 = vadd.f32 %v809_v37, %v679_v26 }
 0x274   :  { %v1251_v44 = vpop.f32.mrf.mxu0 }
 0x275   :  { %v952_v49 = vadd.f32 %v1251_v44, %v785_v43 }
 0x276   :  { %v912_v51 = vpop.f32.mrf.mxu0 }
 0x277   :  { %v967_v53 = vadd.f32 %v1043_v45, %v952_v49  ;;  %v951_v54 = vadd.f32 %v912_v51, %v780_v46 }
 0x278   :  { %v1254_v55 = vpop.f32.mrf.mxu0 }
 0x279   :  { %975 = vst.msk [vmem:[%s1634_s7 + $0x8] sm:$0xff] %vm278_vm1, %v967_v53  ;;  %v966_v57 = vadd.f32 %v1043_v45, %v951_v54  ;;  %v954_v58 = vadd.f32 %v1254_v55, %v795_v52 }
 0x27a   :  { %v922_v60 = vpop.f32.mrf.mxu0 }
 0x27b   :  { %974 = vst.msk [vmem:[%s1634_s7] sm:$0xff] %vm278_vm1, %v966_v57  ;;  %v969_v62 = vadd.f32 %v1043_v45, %v954_v58  ;;  %v953_v63 = vadd.f32 %v922_v60, %v790_v56 }
 0x27c   :  { %v1257_v3 = vpop.f32.mrf.mxu0 }
 0x27d   :  { %977 = vst.msk [vmem:[%s1634_s7 + $0x18] sm:$0xff] %vm278_vm1, %v969_v62  ;;  %v968_v35 = vadd.f32 %v1043_v45, %v953_v63  ;;  %v956_v5 = vadd.f32 %v1257_v3, %v805_v61 }
 0x27e   :  { %v932_v7 = vpop.f32.mrf.mxu0 }
 0x27f   :  { %976 = vst.msk [vmem:[%s1634_s7 + $0x10] sm:$0xff] %vm278_vm1, %v968_v35  ;;  %v971_v9 = vadd.f32 %v1043_v45, %v956_v5  ;;  %v955_v11 = vadd.f32 %v932_v7, %v800_v4 }
 0x280   :  { %v1260_v12 = vpop.f32.mrf.mxu0 }
 0x281   :  { %979 = vst.msk [vmem:[%s1634_s7 + $0x28] sm:$0xff] %vm278_vm1, %v971_v9  ;;  %v970_v14 = vadd.f32 %v1043_v45, %v955_v11  ;;  %v958_v36 = vadd.f32 %v1260_v12, %v815_v8 }
 0x282   :  { %v942_v38 = vpop.f32.mrf.mxu0 }
 0x283   :  { %978 = vst.msk [vmem:[%s1634_s7 + $0x20] sm:$0xff] %vm278_vm1, %v970_v14  ;;  %v973_v16 = vadd.f32 %v1043_v45, %v958_v36  ;;  %v957_v17 = vadd.f32 %v942_v38, %v810_v13 }
 0x285   :  { %981 = vst.msk [vmem:[%s1634_s7 + $0x38] sm:$0xff] %vm278_vm1, %v973_v16  ;;  %v972_v19 = vadd.f32 %v1043_v45, %v957_v17 }
 0x287   :  { %980 = vst.msk [vmem:[%s1634_s7 + $0x30] sm:$0xff] %vm278_vm1, %v972_v19 }

</bundles_post_ra>
